<compile_context>
chip_gen: v5e
topology: v5e:2x2
jax: 0.10.0
libtpu: 0.0.40
codegen_flags: <defaults>
</compile_context>

<pallas_src>
import functools

import jax
import jax.numpy as jnp
from jax import lax
from jax.experimental import pallas as pl
from jax.experimental.pallas import tpu as pltpu

BN_EPS = 1e-3  # matches nn.BatchNorm2d(..., eps=0.001) in Prologue


# ----------------------------------------------------------------------------
# Pallas kernel: fused 3x3 stride-2 conv + folded BN + activation
# ----------------------------------------------------------------------------
def _prologue_kernel(x_ref, w_ref, scale_ref, bias_ref, o_ref, *,
                     k, h_out, w_out, c_in, c_out, act):
    # x_ref:     (1, 2, 2, Hh, Wh, Cin) f32 -- 2x2 parity planes of the padded input
    # w_ref:     (k, k, Cin, Cout) bf16
    # scale_ref: (1, Cout) f32   (gamma / sqrt(var + eps))
    # bias_ref:  (1, Cout) f32   (beta - mean * scale)
    # o_ref:     (1, Ho*Wo, Cout) f32
    planes = [[x_ref[0, p, q, :, :, :] for q in range(2)] for p in range(2)]

    m = h_out * w_out
    acc = jnp.zeros((m, c_out), jnp.float32)
    for di in range(k):
        for dj in range(k):
            plane = planes[di % 2][dj % 2]                       # (Hh, Wh, Cin) f32
            patch = plane[di // 2: di // 2 + h_out,
                          dj // 2: dj // 2 + w_out, :]           # contiguous slice
            lhs = patch.reshape(m, c_in).astype(jnp.bfloat16)    # bf16 into the MXU
            acc = acc + jnp.dot(lhs, w_ref[di, dj, :, :],
                                preferred_element_type=jnp.float32)

    y = acc * scale_ref[...] + bias_ref[...]
    if act == "relu":
        y = jnp.maximum(y, 0.0)
    else:  # "swish" / SiLU
        y = y * (1.0 / (1.0 + jnp.exp(-y)))
    o_ref[0] = y.astype(o_ref.dtype)


# ----------------------------------------------------------------------------
# Wrapper
# ----------------------------------------------------------------------------
def prologue_forward(x_nchw, conv_w, bn, *, act="relu"):
    """Prologue: conv3x3(stride 2, pad 1, no bias) + BN(eps=1e-3) + activation."""
    n, c_in, h, w = x_nchw.shape
    c_out, c_in_w, k, k2 = conv_w.shape
    assert k == 3 and k2 == 3 and c_in_w == c_in
    stride, pad = 2, 1
    h_out = (h + 2 * pad - k) // stride + 1
    w_out = (w + 2 * pad - k) // stride + 1
    hh, wh = h_out + 1, w_out + 1        # parity-plane spatial extents

    # Folded eval-mode BN.
    scale = bn["gamma"] / jnp.sqrt(bn["var"] + BN_EPS)
    bias = bn["beta"] - bn["mean"] * scale
    scale2 = scale.reshape(1, c_out).astype(jnp.float32)
    bias2 = bias.reshape(1, c_out).astype(jnp.float32)

    # Weight: OIHW -> (k, k, Cin, Cout), bf16 for the MXU.
    w_kkio = jnp.transpose(conv_w, (2, 3, 1, 0)).astype(jnp.bfloat16)

    # Input: NCHW -> NHWC -> zero pad -> 2x2 parity planes (n, 2, 2, Hh, Wh, Cin).
    # This is one small fused XLA copy on the *input* (the smallest tensor here);
    # it eliminates all in-kernel padding and strided (XLU-heavy) slicing.
    x = jnp.transpose(x_nchw, (0, 2, 3, 1))
    xp = jnp.pad(x, ((0, 0),
                     (pad, 2 * hh - h - pad),
                     (pad, 2 * wh - w - pad),
                     (0, 0)))
    xp = xp.reshape(n, hh, 2, wh, 2, c_in)
    xpp = jnp.transpose(xp, (0, 2, 4, 1, 3, 5))      # (n, 2, 2, hh, wh, c_in)

    kernel = functools.partial(_prologue_kernel, k=k, h_out=h_out, w_out=w_out,
                               c_in=c_in, c_out=c_out, act=act)

    flops = 2 * n * h_out * w_out * k * k * c_in * c_out
    out_bytes = n * h_out * w_out * c_out * 4
    bytes_accessed = (xpp.size * 4 + w_kkio.size * 2
                      + (scale2.size + bias2.size) * 4 + out_bytes)
    block_bytes = (2 * 2 * hh * wh * c_in * 4 + k * k * c_in * c_out * 2
                   + 2 * c_out * 4 + h_out * w_out * c_out * 4)
    vmem_limit = int(min(100 * 2**20, max(4 * 2**20, 8 * block_bytes)))

    y2 = pl.pallas_call(
        kernel,
        out_shape=jax.ShapeDtypeStruct((n, h_out * w_out, c_out), x_nchw.dtype),
        grid=(n,),
        in_specs=[
            pl.BlockSpec((1, 2, 2, hh, wh, c_in), lambda b: (b, 0, 0, 0, 0, 0)),
            pl.BlockSpec((k, k, c_in, c_out), lambda b: (0, 0, 0, 0)),
            pl.BlockSpec((1, c_out), lambda b: (0, 0)),
            pl.BlockSpec((1, c_out), lambda b: (0, 0)),
        ],
        out_specs=pl.BlockSpec((1, h_out * w_out, c_out), lambda b: (b, 0, 0)),
        compiler_params=pltpu.CompilerParams(
            dimension_semantics=("parallel",),
            vmem_limit_bytes=vmem_limit),
        cost_estimate=pl.CostEstimate(flops=flops, transcendentals=0,
                                      bytes_accessed=bytes_accessed),
    )(xpp, w_kkio, scale2, bias2)

    y = y2.reshape(n, h_out, w_out, c_out)
    return jnp.transpose(y, (0, 3, 1, 2))            # NHWC -> NCHW


# ----------------------------------------------------------------------------
# Pure-JAX reference (eval-mode BN)
# ----------------------------------------------------------------------------
def reference_forward(x_nchw, conv_w, bn, *, act="relu"):
    dn = ("NCHW", "OIHW", "NCHW")
    y = lax.conv_general_dilated(x_nchw, conv_w, (2, 2), [(1, 1), (1, 1)],
                                 dimension_numbers=dn)
    inv = 1.0 / jnp.sqrt(bn["var"] + BN_EPS)
    y = (y - bn["mean"][None, :, None, None]) * inv[None, :, None, None] \
        * bn["gamma"][None, :, None, None] + bn["beta"][None, :, None, None]
    if act == "relu":
        return jnp.maximum(y, 0.0)
    return y * jax.nn.sigmoid(y)


# ----------------------------------------------------------------------------
if __name__ == "__main__":
    # Small Prologue config: Cin=4 -> Cout=32, 16x16 spatial, stride 2.
    N, C_IN, C_OUT, H, W = 2, 4, 32, 16, 16

    key = jax.random.PRNGKey(0)
    k_x, k_w, k_g, k_b, k_m, k_v = jax.random.split(key, 6)
    x = jax.random.normal(k_x, (N, C_IN, H, W), jnp.float32)
    conv_w = 0.1 * jax.random.normal(k_w, (C_OUT, C_IN, 3, 3), jnp.float32)
    bn = dict(
        gamma=1.0 + 0.1 * jax.random.normal(k_g, (C_OUT,), jnp.float32),
        beta=0.1 * jax.random.normal(k_b, (C_OUT,), jnp.float32),
        mean=0.1 * jax.random.normal(k_m, (C_OUT,), jnp.float32),
        var=0.5 + jnp.abs(jax.random.normal(k_v, (C_OUT,), jnp.float32)),
    )

    fwd = jax.jit(lambda x_, w_, bn_: prologue_forward(x_, w_, bn_, act="relu"))
    out = jax.block_until_ready(fwd(x, conv_w, bn))
    assert out.shape == (N, C_OUT, H // 2, W // 2)

    # (a) kernel-math check: reference fed the same bf16-rounded conv operands.
    ref_bf16 = reference_forward(
        x.astype(jnp.bfloat16).astype(jnp.float32),
        conv_w.astype(jnp.bfloat16).astype(jnp.float32), bn, act="relu")
    err_a = float(jnp.max(jnp.abs(out - ref_bf16)))
    assert jnp.allclose(out, ref_bf16, rtol=1e-2, atol=1e-2), \
        f"bf16-operand reference mismatch, max abs err {err_a}"

    # (b) accuracy vs. full-f32 reference (loose tol: bf16 inputs on the MXU).
    ref = reference_forward(x, conv_w, bn, act="relu")
    err_b = float(jnp.max(jnp.abs(out - ref)))
    assert jnp.allclose(out, ref, rtol=5e-2, atol=5e-2), \
        f"f32 reference mismatch, max abs err {err_b}"

    print("KERNEL_OK")
</pallas_src>

<mosaic_0001>
module attributes {stable_mosaic.version = 11 : i64} {
  func.func @_prologue_kernel(%arg0: i32, %arg1: memref<1x2x2x9x9x4xf32, #tpu.memory_space<vmem>>, %arg2: memref<3x3x4x32xbf16, #tpu.memory_space<vmem>>, %arg3: memref<1x32xf32, #tpu.memory_space<vmem>>, %arg4: memref<1x32xf32, #tpu.memory_space<vmem>>, %arg5: memref<1x64x32xf32, #tpu.memory_space<vmem>>) attributes {dimension_semantics = [#tpu.dimension_semantics<parallel>], iteration_bounds = array<i64: 2>, scalar_prefetch = 0 : i64, scratch_operands = 0 : i64, tpu.core_type = #tpu.core_type<tc>, window_params = [{transform_indices = @transform_0, window_bounds = array<i64: 1, 2, 2, 9, 9, 4>}, {pipeline_mode = #tpu.pipeline_mode<synchronous>, transform_indices = @transform_1, window_bounds = array<i64: 3, 3, 4, 32>}, {pipeline_mode = #tpu.pipeline_mode<synchronous>, transform_indices = @transform_2, window_bounds = array<i64: 1, 32>}, {pipeline_mode = #tpu.pipeline_mode<synchronous>, transform_indices = @transform_3, window_bounds = array<i64: 1, 32>}, {transform_indices = @transform_4, window_bounds = array<i64: 1, 64, 32>}]} {
    %c0 = arith.constant 0 : index
    %c0_0 = arith.constant 0 : index
    %c0_1 = arith.constant 0 : index
    %c0_2 = arith.constant 0 : index
    %c0_3 = arith.constant 0 : index
    %c0_4 = arith.constant 0 : index
    %0 = vector.load %arg1[%c0, %c0_0, %c0_1, %c0_2, %c0_3, %c0_4] : memref<1x2x2x9x9x4xf32, #tpu.memory_space<vmem>>, vector<1x1x1x9x9x4xf32>
    %1 = vector.shape_cast %0 : vector<1x1x1x9x9x4xf32> to vector<9x9x4xf32>
    %c0_5 = arith.constant 0 : index
    %c0_6 = arith.constant 0 : index
    %c1 = arith.constant 1 : index
    %c0_7 = arith.constant 0 : index
    %c0_8 = arith.constant 0 : index
    %c0_9 = arith.constant 0 : index
    %2 = vector.load %arg1[%c0_5, %c0_6, %c1, %c0_7, %c0_8, %c0_9] : memref<1x2x2x9x9x4xf32, #tpu.memory_space<vmem>>, vector<1x1x1x9x9x4xf32>
    %3 = vector.shape_cast %2 : vector<1x1x1x9x9x4xf32> to vector<9x9x4xf32>
    %c0_10 = arith.constant 0 : index
    %c1_11 = arith.constant 1 : index
    %c0_12 = arith.constant 0 : index
    %c0_13 = arith.constant 0 : index
    %c0_14 = arith.constant 0 : index
    %c0_15 = arith.constant 0 : index
    %4 = vector.load %arg1[%c0_10, %c1_11, %c0_12, %c0_13, %c0_14, %c0_15] : memref<1x2x2x9x9x4xf32, #tpu.memory_space<vmem>>, vector<1x1x1x9x9x4xf32>
    %5 = vector.shape_cast %4 : vector<1x1x1x9x9x4xf32> to vector<9x9x4xf32>
    %c0_16 = arith.constant 0 : index
    %c1_17 = arith.constant 1 : index
    %c1_18 = arith.constant 1 : index
    %c0_19 = arith.constant 0 : index
    %c0_20 = arith.constant 0 : index
    %c0_21 = arith.constant 0 : index
    %6 = vector.load %arg1[%c0_16, %c1_17, %c1_18, %c0_19, %c0_20, %c0_21] : memref<1x2x2x9x9x4xf32, #tpu.memory_space<vmem>>, vector<1x1x1x9x9x4xf32>
    %7 = vector.shape_cast %6 : vector<1x1x1x9x9x4xf32> to vector<9x9x4xf32>
    %cst = arith.constant 0.000000e+00 : f32
    %8 = vector.broadcast %cst : f32 to vector<64x32xf32>
    %9 = vector.extract_strided_slice %1 {offsets = [0, 0, 0], sizes = [8, 8, 4], strides = [1, 1, 1]} : vector<9x9x4xf32> to vector<8x8x4xf32>
    %10 = vector.shape_cast %9 : vector<8x8x4xf32> to vector<64x4xf32>
    %11 = arith.truncf %10 : vector<64x4xf32> to vector<64x4xbf16>
    %c0_22 = arith.constant 0 : index
    %c0_23 = arith.constant 0 : index
    %c0_24 = arith.constant 0 : index
    %c0_25 = arith.constant 0 : index
    %12 = vector.load %arg2[%c0_22, %c0_23, %c0_24, %c0_25] : memref<3x3x4x32xbf16, #tpu.memory_space<vmem>>, vector<1x1x4x32xbf16>
    %13 = vector.shape_cast %12 : vector<1x1x4x32xbf16> to vector<4x32xbf16>
    %cst_26 = arith.constant dense<0.000000e+00> : vector<64x32xf32>
    %14 = tpu.matmul %11, %13, %cst_26 {dimension_numbers = #tpu.dot_dimension_numbers<[1], [0], [0], [1], [0, 0, 1, 1], [], []>} : vector<64x4xbf16>, vector<4x32xbf16>, vector<64x32xf32> -> vector<64x32xf32>
    %15 = arith.addf %8, %14 : vector<64x32xf32>
    %16 = vector.extract_strided_slice %3 {offsets = [0, 0, 0], sizes = [8, 8, 4], strides = [1, 1, 1]} : vector<9x9x4xf32> to vector<8x8x4xf32>
    %17 = vector.shape_cast %16 : vector<8x8x4xf32> to vector<64x4xf32>
    %18 = arith.truncf %17 : vector<64x4xf32> to vector<64x4xbf16>
    %c0_27 = arith.constant 0 : index
    %c1_28 = arith.constant 1 : index
    %c0_29 = arith.constant 0 : index
    %c0_30 = arith.constant 0 : index
    %19 = vector.load %arg2[%c0_27, %c1_28, %c0_29, %c0_30] : memref<3x3x4x32xbf16, #tpu.memory_space<vmem>>, vector<1x1x4x32xbf16>
    %20 = vector.shape_cast %19 : vector<1x1x4x32xbf16> to vector<4x32xbf16>
    %cst_31 = arith.constant dense<0.000000e+00> : vector<64x32xf32>
    %21 = tpu.matmul %18, %20, %cst_31 {dimension_numbers = #tpu.dot_dimension_numbers<[1], [0], [0], [1], [0, 0, 1, 1], [], []>} : vector<64x4xbf16>, vector<4x32xbf16>, vector<64x32xf32> -> vector<64x32xf32>
    %22 = arith.addf %15, %21 : vector<64x32xf32>
    %23 = vector.extract_strided_slice %1 {offsets = [0, 1, 0], sizes = [8, 8, 4], strides = [1, 1, 1]} : vector<9x9x4xf32> to vector<8x8x4xf32>
    %24 = vector.shape_cast %23 : vector<8x8x4xf32> to vector<64x4xf32>
    %25 = arith.truncf %24 : vector<64x4xf32> to vector<64x4xbf16>
    %c0_32 = arith.constant 0 : index
    %c2 = arith.constant 2 : index
    %c0_33 = arith.constant 0 : index
    %c0_34 = arith.constant 0 : index
    %26 = vector.load %arg2[%c0_32, %c2, %c0_33, %c0_34] : memref<3x3x4x32xbf16, #tpu.memory_space<vmem>>, vector<1x1x4x32xbf16>
    %27 = vector.shape_cast %26 : vector<1x1x4x32xbf16> to vector<4x32xbf16>
    %cst_35 = arith.constant dense<0.000000e+00> : vector<64x32xf32>
    %28 = tpu.matmul %25, %27, %cst_35 {dimension_numbers = #tpu.dot_dimension_numbers<[1], [0], [0], [1], [0, 0, 1, 1], [], []>} : vector<64x4xbf16>, vector<4x32xbf16>, vector<64x32xf32> -> vector<64x32xf32>
    %29 = arith.addf %22, %28 : vector<64x32xf32>
    %30 = vector.extract_strided_slice %5 {offsets = [0, 0, 0], sizes = [8, 8, 4], strides = [1, 1, 1]} : vector<9x9x4xf32> to vector<8x8x4xf32>
    %31 = vector.shape_cast %30 : vector<8x8x4xf32> to vector<64x4xf32>
    %32 = arith.truncf %31 : vector<64x4xf32> to vector<64x4xbf16>
    %c1_36 = arith.constant 1 : index
    %c0_37 = arith.constant 0 : index
    %c0_38 = arith.constant 0 : index
    %c0_39 = arith.constant 0 : index
    %33 = vector.load %arg2[%c1_36, %c0_37, %c0_38, %c0_39] : memref<3x3x4x32xbf16, #tpu.memory_space<vmem>>, vector<1x1x4x32xbf16>
    %34 = vector.shape_cast %33 : vector<1x1x4x32xbf16> to vector<4x32xbf16>
    %cst_40 = arith.constant dense<0.000000e+00> : vector<64x32xf32>
    %35 = tpu.matmul %32, %34, %cst_40 {dimension_numbers = #tpu.dot_dimension_numbers<[1], [0], [0], [1], [0, 0, 1, 1], [], []>} : vector<64x4xbf16>, vector<4x32xbf16>, vector<64x32xf32> -> vector<64x32xf32>
    %36 = arith.addf %29, %35 : vector<64x32xf32>
    %37 = vector.extract_strided_slice %7 {offsets = [0, 0, 0], sizes = [8, 8, 4], strides = [1, 1, 1]} : vector<9x9x4xf32> to vector<8x8x4xf32>
    %38 = vector.shape_cast %37 : vector<8x8x4xf32> to vector<64x4xf32>
    %39 = arith.truncf %38 : vector<64x4xf32> to vector<64x4xbf16>
    %c1_41 = arith.constant 1 : index
    %c1_42 = arith.constant 1 : index
    %c0_43 = arith.constant 0 : index
    %c0_44 = arith.constant 0 : index
    %40 = vector.load %arg2[%c1_41, %c1_42, %c0_43, %c0_44] : memref<3x3x4x32xbf16, #tpu.memory_space<vmem>>, vector<1x1x4x32xbf16>
    %41 = vector.shape_cast %40 : vector<1x1x4x32xbf16> to vector<4x32xbf16>
    %cst_45 = arith.constant dense<0.000000e+00> : vector<64x32xf32>
    %42 = tpu.matmul %39, %41, %cst_45 {dimension_numbers = #tpu.dot_dimension_numbers<[1], [0], [0], [1], [0, 0, 1, 1], [], []>} : vector<64x4xbf16>, vector<4x32xbf16>, vector<64x32xf32> -> vector<64x32xf32>
    %43 = arith.addf %36, %42 : vector<64x32xf32>
    %44 = vector.extract_strided_slice %5 {offsets = [0, 1, 0], sizes = [8, 8, 4], strides = [1, 1, 1]} : vector<9x9x4xf32> to vector<8x8x4xf32>
    %45 = vector.shape_cast %44 : vector<8x8x4xf32> to vector<64x4xf32>
    %46 = arith.truncf %45 : vector<64x4xf32> to vector<64x4xbf16>
    %c1_46 = arith.constant 1 : index
    %c2_47 = arith.constant 2 : index
    %c0_48 = arith.constant 0 : index
    %c0_49 = arith.constant 0 : index
    %47 = vector.load %arg2[%c1_46, %c2_47, %c0_48, %c0_49] : memref<3x3x4x32xbf16, #tpu.memory_space<vmem>>, vector<1x1x4x32xbf16>
    %48 = vector.shape_cast %47 : vector<1x1x4x32xbf16> to vector<4x32xbf16>
    %cst_50 = arith.constant dense<0.000000e+00> : vector<64x32xf32>
    %49 = tpu.matmul %46, %48, %cst_50 {dimension_numbers = #tpu.dot_dimension_numbers<[1], [0], [0], [1], [0, 0, 1, 1], [], []>} : vector<64x4xbf16>, vector<4x32xbf16>, vector<64x32xf32> -> vector<64x32xf32>
    %50 = arith.addf %43, %49 : vector<64x32xf32>
    %51 = vector.extract_strided_slice %1 {offsets = [1, 0, 0], sizes = [8, 8, 4], strides = [1, 1, 1]} : vector<9x9x4xf32> to vector<8x8x4xf32>
    %52 = vector.shape_cast %51 : vector<8x8x4xf32> to vector<64x4xf32>
    %53 = arith.truncf %52 : vector<64x4xf32> to vector<64x4xbf16>
    %c2_51 = arith.constant 2 : index
    %c0_52 = arith.constant 0 : index
    %c0_53 = arith.constant 0 : index
    %c0_54 = arith.constant 0 : index
    %54 = vector.load %arg2[%c2_51, %c0_52, %c0_53, %c0_54] : memref<3x3x4x32xbf16, #tpu.memory_space<vmem>>, vector<1x1x4x32xbf16>
    %55 = vector.shape_cast %54 : vector<1x1x4x32xbf16> to vector<4x32xbf16>
    %cst_55 = arith.constant dense<0.000000e+00> : vector<64x32xf32>
    %56 = tpu.matmul %53, %55, %cst_55 {dimension_numbers = #tpu.dot_dimension_numbers<[1], [0], [0], [1], [0, 0, 1, 1], [], []>} : vector<64x4xbf16>, vector<4x32xbf16>, vector<64x32xf32> -> vector<64x32xf32>
    %57 = arith.addf %50, %56 : vector<64x32xf32>
    %58 = vector.extract_strided_slice %3 {offsets = [1, 0, 0], sizes = [8, 8, 4], strides = [1, 1, 1]} : vector<9x9x4xf32> to vector<8x8x4xf32>
    %59 = vector.shape_cast %58 : vector<8x8x4xf32> to vector<64x4xf32>
    %60 = arith.truncf %59 : vector<64x4xf32> to vector<64x4xbf16>
    %c2_56 = arith.constant 2 : index
    %c1_57 = arith.constant 1 : index
    %c0_58 = arith.constant 0 : index
    %c0_59 = arith.constant 0 : index
    %61 = vector.load %arg2[%c2_56, %c1_57, %c0_58, %c0_59] : memref<3x3x4x32xbf16, #tpu.memory_space<vmem>>, vector<1x1x4x32xbf16>
    %62 = vector.shape_cast %61 : vector<1x1x4x32xbf16> to vector<4x32xbf16>
    %cst_60 = arith.constant dense<0.000000e+00> : vector<64x32xf32>
    %63 = tpu.matmul %60, %62, %cst_60 {dimension_numbers = #tpu.dot_dimension_numbers<[1], [0], [0], [1], [0, 0, 1, 1], [], []>} : vector<64x4xbf16>, vector<4x32xbf16>, vector<64x32xf32> -> vector<64x32xf32>
    %64 = arith.addf %57, %63 : vector<64x32xf32>
    %65 = vector.extract_strided_slice %1 {offsets = [1, 1, 0], sizes = [8, 8, 4], strides = [1, 1, 1]} : vector<9x9x4xf32> to vector<8x8x4xf32>
    %66 = vector.shape_cast %65 : vector<8x8x4xf32> to vector<64x4xf32>
    %67 = arith.truncf %66 : vector<64x4xf32> to vector<64x4xbf16>
    %c2_61 = arith.constant 2 : index
    %c2_62 = arith.constant 2 : index
    %c0_63 = arith.constant 0 : index
    %c0_64 = arith.constant 0 : index
    %68 = vector.load %arg2[%c2_61, %c2_62, %c0_63, %c0_64] : memref<3x3x4x32xbf16, #tpu.memory_space<vmem>>, vector<1x1x4x32xbf16>
    %69 = vector.shape_cast %68 : vector<1x1x4x32xbf16> to vector<4x32xbf16>
    %cst_65 = arith.constant dense<0.000000e+00> : vector<64x32xf32>
    %70 = tpu.matmul %67, %69, %cst_65 {dimension_numbers = #tpu.dot_dimension_numbers<[1], [0], [0], [1], [0, 0, 1, 1], [], []>} : vector<64x4xbf16>, vector<4x32xbf16>, vector<64x32xf32> -> vector<64x32xf32>
    %71 = arith.addf %64, %70 : vector<64x32xf32>
    %c0_66 = arith.constant 0 : index
    %c0_67 = arith.constant 0 : index
    %72 = vector.load %arg3[%c0_66, %c0_67] : memref<1x32xf32, #tpu.memory_space<vmem>>, vector<1x32xf32>
    %73 = vector.broadcast %72 : vector<1x32xf32> to vector<64x32xf32>
    %74 = arith.mulf %71, %73 : vector<64x32xf32>
    %c0_68 = arith.constant 0 : index
    %c0_69 = arith.constant 0 : index
    %75 = vector.load %arg4[%c0_68, %c0_69] : memref<1x32xf32, #tpu.memory_space<vmem>>, vector<1x32xf32>
    %76 = vector.broadcast %75 : vector<1x32xf32> to vector<64x32xf32>
    %77 = arith.addf %74, %76 : vector<64x32xf32>
    %cst_70 = arith.constant 0.000000e+00 : f32
    %78 = vector.broadcast %cst_70 : f32 to vector<64x32xf32>
    %79 = arith.maximumf %77, %78 : vector<64x32xf32>
    %c0_71 = arith.constant 0 : index
    %c0_72 = arith.constant 0 : index
    %c0_73 = arith.constant 0 : index
    %80 = vector.load %arg5[%c0_71, %c0_72, %c0_73] : memref<1x64x32xf32, #tpu.memory_space<vmem>>, vector<1x64x32xf32>
    %81 = vector.shape_cast %80 : vector<1x64x32xf32> to vector<64x32xf32>
    %82 = vector.shape_cast %79 : vector<64x32xf32> to vector<1x64x32xf32>
    tpu.vector_store %arg5[%c0_71, %c0_72, %c0_73], %82 {strides = array<i32>} : memref<1x64x32xf32, #tpu.memory_space<vmem>>, vector<1x64x32xf32>,
    return
  }
  func.func @transform_0(%arg0: i32) -> (i32, i32, i32, i32, i32, i32) {
    %c0_i32 = arith.constant 0 : i32
    %c0_i32_0 = arith.constant 0 : i32
    %c0_i32_1 = arith.constant 0 : i32
    %c0_i32_2 = arith.constant 0 : i32
    %c0_i32_3 = arith.constant 0 : i32
    %c0_i32_4 = arith.constant 0 : i32
    return %arg0, %c0_i32, %c0_i32_0, %c0_i32_1, %c0_i32_2, %c0_i32_3 : i32, i32, i32, i32, i32, i32
  }
  func.func @transform_1(%arg0: i32) -> (i32, i32, i32, i32) {
    %c0_i32 = arith.constant 0 : i32
    %c0_i32_0 = arith.constant 0 : i32
    %c0_i32_1 = arith.constant 0 : i32
    %c0_i32_2 = arith.constant 0 : i32
    %c0_i32_3 = arith.constant 0 : i32
    return %c0_i32, %c0_i32_0, %c0_i32_1, %c0_i32_2 : i32, i32, i32, i32
  }
  func.func @transform_2(%arg0: i32) -> (i32, i32) {
    %c0_i32 = arith.constant 0 : i32
    %c0_i32_0 = arith.constant 0 : i32
    %c0_i32_1 = arith.constant 0 : i32
    return %c0_i32, %c0_i32_0 : i32, i32
  }
  func.func @transform_3(%arg0: i32) -> (i32, i32) {
    %c0_i32 = arith.constant 0 : i32
    %c0_i32_0 = arith.constant 0 : i32
    %c0_i32_1 = arith.constant 0 : i32
    return %c0_i32, %c0_i32_0 : i32, i32
  }
  func.func @transform_4(%arg0: i32) -> (i32, i32, i32) {
    %c0_i32 = arith.constant 0 : i32
    %c0_i32_0 = arith.constant 0 : i32
    %c0_i32_1 = arith.constant 0 : i32
    return %arg0, %c0_i32, %c0_i32_0 : i32, i32, i32
  }
}

</mosaic_0001>

<bundles_post_ra>
// kernel: _lambda_.1
= control target key start
LH: loop header
LB: loop body
LE: loop exit
PB: predicated region body
PF: predicated region fallthrough
CT: control target
= control target key end

     0   :  { %9 = vsyncpa [#allocation3], 0  ;;  %s1677_s0 = inlined_call_operand.vmem [shape: f32[2,2,2,9,9,4], index: 0, kind: input, shape index: {}]   ;;  %s1678_s1 = inlined_call_operand.vmem [shape: bf16[3,3,4,32], index: 1, kind: input, shape index: {}]   ;;  %s1679_s2 = inlined_call_operand.vmem [shape: f32[1,32], index: 2, kind: input, shape index: {}]   ;;  %s1680_s3 = inlined_call_operand.vmem [shape: f32[1,32], index: 3, kind: input, shape index: {}]   ;;  %s1681_s4 = inlined_call_operand.hbm [shape: f32[2,64,32], index: 4, kind: output, shape index: {}]  }
   0x1   :  { %11 = vsyncpa [#allocation3 + $0x1], 0  ;;  %s1207_s15 = smov 0   ;;  %s1209_s16 = smov 0  }
   0x2   :  { %s1211_s17 = smov 0   ;;  %s1213_s18 = smov 0  }
   0x3 LB: > { %s1228_s19 = sadd.s32 4294967295, %s1178_s18   ;;  %s980_s20 = sadd.s32 4294967294, %s1178_s18   ;;  %s1178_s18 = sphi %s1213_s18, %s1687_s18   ;;  %s1174_s17 = sphi %s1211_s17, %s1686_s17   ;;  %s1170_s16 = sphi %s1209_s16, %s1685_s16   ;;  %s1166_s15 = sphi %s1207_s15, %s1684_s15  }
   0x4   : > { %s1232_s21 = sadd.s32 1, %s1178_s18   ;;  %s113_s22 = sadd.s32 1, %s1174_s17 }
   0x5   : > { %s110_s23 = ssub.s32 %s1178_s18, %s1232_s21  ;;  %p123_p0 = scmp.ne.s32.totalorder %s1174_s17, %s1170_s16 }
   0x6   : > { %p111_p1 = scmp.eq.s32.totalorder %s110_s23, 0  ;;  %p124_p2 = scmp.eq.s32.totalorder %s1228_s19, 1 }
   0x7   : > { %p129_p3 = scmp.ne.s32.totalorder %s1170_s16, %s1166_s15  ;;  %p130_p4 = scmp.eq.s32.totalorder %s980_s20, 1 }
   0x8   : > { %s1243_s24 = scalar_select %p111_p1, %s1174_s17, %s113_s22  }
   0x9   : > { %p1245_p5 = por %p124_p2, %p123_p0  ;;  %p1249_p6 = por %p130_p4, %p129_p3 }
   0xa   : > { %p983_p7 = scmp.ge.s32.totalorder %s1178_s18, 1  ;;  %p165_p8 = scmp.lt.s32.totalorder %s1178_s18, 3 }
   0xc   : > { %p166_p9 = pnand %p983_p7, %p165_p8 }
   0xd   : > { %p191_p10 = scmp.lt.s32.totalorder (!%p166_p9), %s1228_s19, 1  ;;  %s188_s9 = sand.u32 (!%p166_p9), 1, %s1170_s16  }
   0xe   : > { %169 = sbr.rel (%p166_p9) target bundleno = 312 (0x138), region = 36  ;;  %s1068_s14 = sshll.u32 (!%p166_p9), %s1228_s19, 6 }
   0xf   : > { %s914_s23 = scalar_lea.hbm (!%p166_p9), %s1681_s4, %s1068_s14 }
  0x10   : > { %s917_s28 = sshll.u32 (!%p166_p9), %s914_s23, 4  ;;  %s918_s28 = int_to_ptr.hbm [resolvable:$true] %s917_s28 }
  0x11   : > { %s1130_s29 = sshra.s32 (!%p166_p9), %s918_s28, 4  ;;  %s1131_s29 = int_to_ptr.hbm [resolvable:$true] %s1130_s29 }
  0x12   : > { %p1137_p0 = scmp.lt.s32.totalorder (!%p166_p9), %s1131_s29, %s1681_s4 }
  0x13   : > { %v1019_v0 = vld [vmem:[%s1678_s1 + $0x2] sm:$0x3]  ;;  %vm275_vm0 = vcmask 1041408   ;;  %v1028_v2 = vld [vmem:[%s1678_s1 + $0x4] sm:$0x3]  ;;  %s192_s7 = scalar_select %p191_p10, %s1228_s19, 1 }
  0x14   : > { %v277_v1 = vsel %vm275_vm0, %v1019_v0, 0  ;;  %v1033_v3 = vld [vmem:[%s1678_s1 + $0x6] sm:$0x3]  ;;  %v420_v4 = vsel %vm275_vm0, %v1028_v2, 0  ;;  %v255_v6 = vld [vmem:[%s1678_s1] sm:$0x3] }
  0x15   : > { %1069 = vmatpush.bf16.msra.mxu1 %v277_v1  ;;  %1070 = vmatpush.bf16.msra.mxu2 %v277_v1  ;;  %v478_v5 = vsel %vm275_vm0, %v1033_v3, 0  ;;  %v321_v7 = vsel %vm275_vm0, %v255_v6, 0  ;;  %v1038_v8 = vld [vmem:[%s1678_s1 + $0x8] sm:$0x3]  ;;  %s1072_s12 = smul.u32 576, %s192_s7  ;;  %vm262_vm1 = vcmask 31744  }
  0x16   : > { %1071 = vmatpush.bf16.msra.mxu3 %v277_v1  ;;  %286 = vmatpush.bf16.msra.mxu0 %v277_v1  ;;  %v536_v9 = vsel %vm275_vm0, %v1038_v8, 0  ;;  %v1048_v10 = vld [vmem:[%s1678_s1 + $0xc] sm:$0x3]  ;;  %v1053_v11 = vld [vmem:[%s1678_s1 + $0xe] sm:$0x3]  ;;  %vm368_vm2 = vcmask 1046528  }
  0x17   : > { %v1043_v12 = vld [vmem:[%s1678_s1 + $0xa] sm:$0x3]  ;;  %s1289_s30 = scalar_lea.vmem %s1677_s0, %s1072_s12  ;;  %v1058_v13 = vld [vmem:[%s1678_s1 + $0x10] sm:$0x3]  ;;  %v700_v25 = vsel %vm275_vm0, %v1048_v10, 0  ;;  %v758_v28 = vsel %vm275_vm0, %v1053_v11, 0 }
  0x18   : > { %v1295_v14 = vld [vmem:[%s1289_s30 + $0xb0] sm:$0xff]  ;;  %v1298_v15 = vld [vmem:[%s1289_s30 + $0xc0] sm:$0xff]  ;;  %v642_v29 = vsel %vm275_vm0, %v1043_v12, 0  ;;  %v822_v30 = vsel %vm275_vm0, %v1058_v13, 0  ;;  %v198_v33 = vld [vmem:[%s1289_s30 + $0x8] sm:$0x1] }
  0x19   : > { %429 = vmatpush.bf16.msrb.mxu2 %v420_v4  ;;  %330 = vmatpush.bf16.msrb.mxu1 %v321_v7  ;;  %v1301_v16 = vld [vmem:[%s1289_s30 + $0xd0] sm:$0xff]  ;;  %v257_v17 = vpack.c.bf16 %v1298_v15, %v1295_v14  ;;  %v1306_v18 = vld [vmem:[%s1289_s30 + $0xe0] sm:$0xff]  ;;  %v200_v34 = vld [vmem:[%s1289_s30 + $0x18] sm:$0x1]  ;;  %v370_v37 = vrot.slane %v198_v33, 1  ;;  %s984_s12 = sshll.u32 %s188_s9, 6 }
  0x1a   : > { %487 = vmatpush.bf16.msrb.mxu3 %v478_v5  ;;  %545 = vmatpush.bf16.msrb.mxu0 %v536_v9  ;;  %v1309_v19 = vld [vmem:[%s1289_s30 + $0xf0] sm:$0xff]  ;;  %v1312_v20 = vld [vmem:[%s1289_s30 + $0x100] sm:$0xff]  ;;  %v258_v21 = vpack.c.bf16 %v1306_v18, %v1301_v16  ;;  %v373_v38 = vrot.slane %v200_v34, 1  ;;  %v202_v51 = vld [vmem:[%s1289_s30 + $0x28] sm:$0x1]  ;;  %vm893_vm3 = vcmask 261120  }
  0x1b   : > { %v259_v22 = vpack.c.bf16 %v1312_v20, %v1309_v19  ;;  %v986_v23 = vld [vmem:[%s1289_s30 + $0x90] sm:$0xff]  ;;  %v1320_v24 = vld [vmem:[%s1289_s30 + $0xa0] sm:$0xff]  ;;  %1021 = vmatmul.msk.bf16.vlgmr.msra.gmra.mxu1 %vm262_vm1, %v257_v17  ;;  %v204_v52 = vld [vmem:[%s1289_s30 + $0x38] sm:$0x1]  ;;  %v376_v55 = vrot.slane %v202_v51, 1  ;;  %s1588_s13 = scalar_lea.vmem [#allocation2], %s984_s12 }
  0x1c   : > { %v256_v26 = vpack.c.bf16 %v1320_v24, %v986_v23  ;;  %v739_v27 = vpack.c.bf16 %v1295_v14, %v1320_v24  ;;  %1022 = vmatmul.msk.bf16.vlgmr.msra.gmra.mxu2 %vm262_vm1, %v258_v21  ;;  %v197_v31 = vld [vmem:[%s1289_s30] sm:$0xff]  ;;  %v1335_v32 = vld [vmem:[%s1289_s30 + $0x10] sm:$0xff]  ;;  %v379_v56 = vrot.slane %v204_v52, 1  ;;  %v206_v5 = vld [vmem:[%s1289_s30 + $0x48] sm:$0x1]  ;;  %v740_v24 = vpack.c.bf16 %v1301_v16, %v1298_v15  ;;  %s915_s27 = sshll.u32 %s1588_s13, 4  ;;  %s916_s27 = int_to_ptr.vmem [resolvable:$true] %s915_s27 }
  0x1d   : > { %1023 = vmatmul.msk.bf16.vlgmr.msra.gmra.mxu3 %vm262_vm1, %v259_v22  ;;  %709 = vmatpush.bf16.msra.mxu2 %v700_v25  ;;  %v369_v35 = vrot.slane %v197_v31, 1  ;;  %v372_v36 = vrot.slane %v1335_v32, 1  ;;  %v1345_v41 = vld [vmem:[%s1289_s30 + $0x120] sm:$0xff]  ;;  %v1348_v42 = vld [vmem:[%s1289_s30 + $0x130] sm:$0xff]  ;;  %v251_v45 = vpack.c.bf16 %v1335_v32, %v197_v31  ;;  %v208_v6 = vld [vmem:[%s1289_s30 + $0x58] sm:$0x1] }
  0x1e   : > { %1020 = vmatmul.msk.bf16.vlgmr.msra.gmra.mxu0 %vm262_vm1, %v256_v26  ;;  %767 = vmatpush.bf16.msra.mxu3 %v758_v28  ;;  %v1011_v43 = vld [vmem:[%s1289_s30 + $0x1b0] sm:$0xff]  ;;  %v1012_v44 = vld [vmem:[%s1289_s30 + $0x1c0] sm:$0xff]  ;;  %v459_v47 = vpack.c.bf16 %v1348_v42, %v1345_v41  ;;  %v382_v9 = vrot.slane %v206_v5, 1  ;;  %v385_v10 = vrot.slane %v208_v6, 1  ;;  %v210_v31 = vld [vmem:[%s1289_s30 + $0x68] sm:$0x1] }
  0x1f   : > { %651 = vmatpush.bf16.msra.mxu1 %v642_v29  ;;  %831 = vmatpush.bf16.msra.mxu0 %v822_v30  ;;  %v371_v39 = vsel %vm368_vm2, %v369_v35, %v370_v37  ;;  %v1342_v40 = vsel %vm368_vm2, %v372_v36, %v373_v38  ;;  %v517_v48 = vpack.c.bf16 %v1012_v44, %v1011_v43  ;;  %v1361_v49 = vld [vmem:[%s1289_s30 + $0x20] sm:$0xff]  ;;  %v1364_v50 = vld [vmem:[%s1289_s30 + $0x30] sm:$0xff]  ;;  %v212_v33 = vld [vmem:[%s1289_s30 + $0x78] sm:$0x1]  ;;  %v388_v36 = vrot.slane %v210_v31, 1  ;;  %s903_s19 = scalar_lea.sflag [#allocation3], %s188_s9 }
  0x20   : > { %v401_v46 = vpack.c.bf16 %v1342_v40, %v371_v39  ;;  %v375_v53 = vrot.slane %v1361_v49, 1  ;;  %v378_v54 = vrot.slane %v1364_v50, 1  ;;  %v1377_v59 = vld [vmem:[%s1289_s30 + $0x140] sm:$0xff]  ;;  %v1380_v60 = vld [vmem:[%s1289_s30 + $0x150] sm:$0xff]  ;;  %v252_v63 = vpack.c.bf16 %v1364_v50, %v1361_v49  ;;  %s1136_s7 = scalar_lea.hbm %s1681_s4, 128 }
  0x21   : > { %v1013_v61 = vld [vmem:[%s1289_s30 + $0x1d0] sm:$0xff]  ;;  %v1014_v62 = vld [vmem:[%s1289_s30 + $0x1e0] sm:$0xff]  ;;  %v460_v1 = vpack.c.bf16 %v1380_v60, %v1377_v59  ;;  %v391_v37 = vrot.slane %v212_v33, 1 }
  0x22   : > { %v1371_v57 = vsel %vm368_vm2, %v375_v53, %v376_v55  ;;  %v1374_v58 = vsel %vm368_vm2, %v378_v54, %v379_v56  ;;  %v518_v2 = vpack.c.bf16 %v1014_v62, %v1013_v61  ;;  %v1395_v3 = vld [vmem:[%s1289_s30 + $0x40] sm:$0xff]  ;;  %v1398_v4 = vld [vmem:[%s1289_s30 + $0x50] sm:$0xff]  ;;  %v996_v53 = vld [vmem:[%s1289_s30 + $0x128] sm:$0x1]  ;;  %v591_v55 = vrot.slane %v1345_v41, 1 }
  0x23   : > { %v402_v0 = vpack.c.bf16 %v1374_v58, %v1371_v57  ;;  %v381_v7 = vrot.slane %v1395_v3, 1  ;;  %v384_v8 = vrot.slane %v1398_v4, 1  ;;  %v1411_v13 = vld [vmem:[%s1289_s30 + $0x160] sm:$0xff]  ;;  %v1414_v17 = vld [vmem:[%s1289_s30 + $0x170] sm:$0xff]  ;;  %v253_v23 = vpack.c.bf16 %v1398_v4, %v1395_v3  ;;  %v998_v54 = vld [vmem:[%s1289_s30 + $0x138] sm:$0x1] }
  0x24   : > { %v1015_v21 = vld [vmem:[%s1289_s30 + $0x1f0] sm:$0xff]  ;;  %v1016_v22 = vld [vmem:[%s1289_s30 + $0x200] sm:$0xff]  ;;  %v461_v26 = vpack.c.bf16 %v1414_v17, %v1411_v13  ;;  %v594_v56 = vrot.slane %v1348_v42, 1  ;;  %v592_v61 = vrot.slane %v996_v53, 1  ;;  %v595_v62 = vrot.slane %v998_v54, 1 }
  0x25   : > { %v1405_v11 = vsel %vm368_vm2, %v381_v7, %v382_v9  ;;  %v1408_v12 = vsel %vm368_vm2, %v384_v8, %v385_v10  ;;  %v519_v28 = vpack.c.bf16 %v1016_v22, %v1015_v21  ;;  %v1429_v29 = vld [vmem:[%s1289_s30 + $0x60] sm:$0xff]  ;;  %v1432_v30 = vld [vmem:[%s1289_s30 + $0x70] sm:$0xff]  ;;  %v803_v5 = vpack.c.bf16 %v1371_v57, %v1342_v40  ;;  %v1000_v41 = vld [vmem:[%s1289_s30 + $0x148] sm:$0x1] }
  0x26   : > { %v403_v25 = vpack.c.bf16 %v1408_v12, %v1405_v11  ;;  %v387_v34 = vrot.slane %v1429_v29, 1  ;;  %v390_v35 = vrot.slane %v1432_v30, 1  ;;  %v1443_v43 = vld [vmem:[%s1289_s30 + $0x180] sm:$0xff]  ;;  %v1446_v44 = vld [vmem:[%s1289_s30 + $0x190] sm:$0xff]  ;;  %v1002_v42 = vld [vmem:[%s1289_s30 + $0x158] sm:$0x1]  ;;  %v682_v14 = vpack.c.bf16 %v1395_v3, %v1364_v50 }
  0x27   : > { %v462_v51 = vpack.c.bf16 %v1446_v44, %v1443_v43  ;;  %v598_v40 = vrot.slane %v1000_v41, 1  ;;  %v601_v57 = vrot.slane %v1002_v42, 1  ;;  %v603_v50 = vrot.slane %v1411_v13, 1  ;;  %v1008_v13 = vld [vmem:[%s1289_s30 + $0x188] sm:$0x1]  ;;  %v994_v33 = vld [vmem:[%s1289_s30 + $0x110] sm:$0xff] }
  0x28   : > { %v389_v38 = vsel %vm368_vm2, %v387_v34, %v388_v36  ;;  %v1440_v39 = vsel %vm368_vm2, %v390_v35, %v391_v37  ;;  %v606_v15 = vrot.slane %v1414_v17, 1  ;;  %v741_v21 = vpack.c.bf16 %v1309_v19, %v1306_v18  ;;  %v1010_v17 = vld [vmem:[%s1289_s30 + $0x198] sm:$0x1] }
  0x29   : > { %v805_v22 = vpack.c.bf16 %v389_v38, %v1408_v12  ;;  %v610_v18 = vrot.slane %v1008_v13, 1  ;;  %v613_v19 = vrot.slane %v1010_v17, 1 }
  0x2b   : > { %1024 = vmatmul.msk.bf16.vlgmr.msrb.gmra.mxu1 %vm262_vm1, %v251_v45  ;;  %v1017_v45 = vld [vmem:[%s1289_s30 + $0x210] sm:$0xff] }
  0x2c   : > { %1029 = vmatmul.msk.bf16.vlgmr.msrb.gmra.mxu2 %vm262_vm1, %v401_v46  ;;  %v1018_v46 = vld [vmem:[%s1289_s30 + $0x220] sm:$0xff] }
  0x2d   : > { %1034 = vmatmul.msk.bf16.vlgmr.msrb.gmra.mxu3 %vm262_vm1, %v459_v47  ;;  %v254_v47 = vpack.c.bf16 %v1432_v30, %v1429_v29  ;;  %v520_v52 = vpack.c.bf16 %v1018_v46, %v1017_v45 }
  0x2e   : > { %1039 = vmatmul.msk.bf16.vlgmr.msrb.gmra.mxu0 %vm262_vm1, %v517_v48  ;;  %v404_v48 = vpack.c.bf16 %v1440_v39, %v389_v38  ;;  %v742_v38 = vpack.c.bf16 %v994_v33, %v1312_v20 }
  0x3b   : > { %1025 = vmatmul.msk.bf16.gmra.mxu1 %vm262_vm1, %v252_v63  ;;  %v593_v63 = vsel %vm368_vm2, %v591_v55, %v592_v61 }
  0x3c   : > { %1030 = vmatmul.msk.bf16.gmra.mxu2 %vm262_vm1, %v402_v0  ;;  %v596_v0 = vsel %vm368_vm2, %v594_v56, %v595_v62 }
  0x3d   : > { %1035 = vmatmul.msk.bf16.gmra.mxu3 %vm262_vm1, %v460_v1  ;;  %v623_v1 = vpack.c.bf16 %v596_v0, %v593_v63 }
  0x3e   : > { %1040 = vmatmul.msk.bf16.gmra.mxu0 %vm262_vm1, %v518_v2  ;;  %v681_v2 = vpack.c.bf16 %v1361_v49, %v1335_v32  ;;  %v597_v32 = vrot.slane %v1377_v59, 1  ;;  %v600_v49 = vrot.slane %v1380_v60, 1  ;;  %v1004_v59 = vld [vmem:[%s1289_s30 + $0x168] sm:$0x1]  ;;  %v1006_v60 = vld [vmem:[%s1289_s30 + $0x178] sm:$0x1] }
  0x3f   : > { %v604_v16 = vrot.slane %v1004_v59, 1 }
  0x40   : > { %v599_v6 = vsel %vm368_vm2, %v597_v32, %v598_v40  ;;  %v602_v7 = vsel %vm368_vm2, %v600_v49, %v601_v57 }
  0x41   : > { %v624_v8 = vpack.c.bf16 %v602_v7, %v599_v6  ;;  %v605_v3 = vsel %vm368_vm2, %v603_v50, %v604_v16 }
  0x4b   : > { %1026 = vmatmul.msk.bf16.gmra.mxu1 %vm262_vm1, %v253_v23  ;;  %v213_v23 = vld [vmem:[%s1289_s30 + $0x80] sm:$0xff] }
  0x4c   : > { %1031 = vmatmul.msk.bf16.gmra.mxu2 %vm262_vm1, %v403_v25  ;;  %v214_v25 = vld [vmem:[%s1289_s30 + $0x88] sm:$0x1]  ;;  %v799_v12 = vrot.slane %v213_v23, 1  ;;  %v684_v37 = vpack.c.bf16 %v213_v23, %v1432_v30  ;;  %s1132_s30 = scalar_lea.hbm %s1131_s29, 64 }
  0x4d   : > { %1036 = vmatmul.msk.bf16.gmra.mxu3 %vm262_vm1, %v461_v26  ;;  %v612_v26 = vrot.slane %v1446_v44, 1  ;;  %p1133_p11 = scmp.ne.s32.totalorder %s1131_s29, %s1132_s30  ;;  %p1138_p1 = scmp.lt.s32.totalorder %s1136_s7, %s1132_s30 }
  0x4e   : > { %1041 = vmatmul.msk.bf16.gmra.mxu0 %vm262_vm1, %v519_v28  ;;  %v800_v28 = vrot.slane %v214_v25, 1 }
  0x4f   : > { %v614_v31 = vsel %vm368_vm2, %v612_v26, %v613_v19  ;;  %p1134_p12 = pnand %p1133_p11, %p1245_p5  ;;  %p1139_p2 = por %p1138_p1, %p1137_p0 }
  0x50   : > { %v801_v34 = vsel %vm368_vm2, %v799_v12, %v800_v28 }
  0x51   : > { %p1135_p13 = pneg %p1134_p12 }
  0x53   : > { %p1140_p3 = pnand %p1139_p2, %p1135_p13 }
  0x5b   : > { %1027 = vmatmul.msk.bf16.gmra.mxu1 %vm262_vm1, %v254_v47 }
  0x5c   : > { %1032 = vmatmul.msk.bf16.gmra.mxu2 %vm262_vm1, %v404_v48 }
  0x5d   : > { %1037 = vmatmul.msk.bf16.gmra.mxu3 %vm262_vm1, %v462_v51 }
  0x5e   : > { %1042 = vmatmul.msk.bf16.gmra.mxu0 %vm262_vm1, %v520_v52 }
  0x6b   : > { %1044 = vmatmul.msk.bf16.vlgmr.msra.gmra.mxu1 %vm262_vm1, %v623_v1 }
  0x6c   : > { %1049 = vmatmul.msk.bf16.vlgmr.msra.gmra.mxu2 %vm262_vm1, %v681_v2 }
  0x6d   : > { %1054 = vmatmul.msk.bf16.vlgmr.msra.gmra.mxu3 %vm262_vm1, %v739_v27  ;;  %v804_v27 = vpack.c.bf16 %v1405_v11, %v1374_v58  ;;  %v607_v58 = vrot.slane %v1006_v60, 1  ;;  %v683_v11 = vpack.c.bf16 %v1429_v29, %v1398_v4  ;;  %v609_v4 = vrot.slane %v1443_v43, 1 }
  0x6e   : > { %1059 = vmatmul.msk.bf16.vlgmr.msra.gmra.mxu0 %vm262_vm1, %v803_v5  ;;  %v806_v43 = vpack.c.bf16 %v801_v34, %v1440_v39 }
  0x6f   : > { %v608_v9 = vsel %vm368_vm2, %v606_v15, %v607_v58  ;;  %v611_v29 = vsel %vm368_vm2, %v609_v4, %v610_v18 }
  0x70   : > { %v625_v10 = vpack.c.bf16 %v608_v9, %v605_v3  ;;  %v626_v35 = vpack.c.bf16 %v614_v31, %v611_v29  ;;  %v1575_v29 = vld [vmem:[%s1679_s2] ss:$0 sm:$0xff] }
  0x7b   : > { %1045 = vmatmul.msk.bf16.gmra.mxu1 %vm262_vm1, %v624_v8 }
  0x7c   : > { %1050 = vmatmul.msk.bf16.gmra.mxu2 %vm262_vm1, %v682_v14 }
  0x7d   : > { %1055 = vmatmul.msk.bf16.gmra.mxu3 %vm262_vm1, %v740_v24 }
  0x7e   : > { %1060 = vmatmul.msk.bf16.gmra.mxu0 %vm262_vm1, %v804_v27 }
  0x8b   : > { %1046 = vmatmul.msk.bf16.gmra.mxu1 %vm262_vm1, %v625_v10 }
  0x8c   : > { %1051 = vmatmul.msk.bf16.gmra.mxu2 %vm262_vm1, %v683_v11 }
  0x8d   : > { %1056 = vmatmul.msk.bf16.gmra.mxu3 %vm262_vm1, %v741_v21 }
  0x8e   : > { %1061 = vmatmul.msk.bf16.gmra.mxu0 %vm262_vm1, %v805_v22 }
  0x98   : > { %v293_v36 = vpop.f32.mrf.mxu1 }
  0x9b   : > { %v288_v44 = vpop.f32.mrf.mxu0  ;;  %1047 = vmatmul.msk.bf16.gmra.mxu1 %vm262_vm1, %v626_v35  ;;  %v1581_v35 = vld [vmem:[%s1680_s3] ss:$0 sm:$0xff] }
  0x9c   : > { %1052 = vmatmul.msk.bf16.gmra.mxu2 %vm262_vm1, %v684_v37 }
  0x9d   : > { %1057 = vmatmul.msk.bf16.gmra.mxu3 %vm262_vm1, %v742_v38 }
  0x9e   : > { %1062 = vmatmul.msk.bf16.gmra.mxu0 %vm262_vm1, %v806_v43 }
  0x9f   : > { %v1524_v45 = vpop.f32.mrf.mxu2 }
  0xa0   : > { %v1526_v46 = vpop.f32.mrf.mxu3  ;;  %v1528_v47 = vpop.f32.mrf.mxu1 }
  0xa3   : > { %v290_v30 = vpop.f32.mrf.mxu0 }
  0xa7   : > { %v1530_v48 = vpop.f32.mrf.mxu2 }
  0xa8   : > { %v1532_v20 = vpop.f32.mrf.mxu3  ;;  %v332_v39 = vpop.f32.mrf.mxu1 }
  0xa9   : > { %v333_v15 = vadd.f32 %v332_v39, %v288_v44 }
  0xab   : > { %v547_v51 = vpop.f32.mrf.mxu0 }
  0xaf   : > { %v431_v52 = vpop.f32.mrf.mxu2 }
  0xb0   : > { %v489_v53 = vpop.f32.mrf.mxu3  ;;  %v334_v54 = vpop.f32.mrf.mxu1  ;;  %v451_v58 = vadd.f32 %v431_v52, %v333_v15 }
  0xb1   : > { %v335_v21 = vadd.f32 %v334_v54, %v290_v30 }
  0xb2   : > { %v509_v10 = vadd.f32 %v489_v53, %v451_v58 }
  0xb3   : > { %v549_v55 = vpop.f32.mrf.mxu0 }
  0xb4   : > { %v567_v17 = vadd.f32 %v547_v51, %v509_v10 }
  0xb7   : > { %v433_v56 = vpop.f32.mrf.mxu2 }
  0xb8   : > { %v491_v61 = vpop.f32.mrf.mxu3  ;;  %v337_v62 = vpop.f32.mrf.mxu1  ;;  %v452_v13 = vadd.f32 %v433_v56, %v335_v21 }
  0xb9   : > { %v338_v12 = vadd.f32 %v337_v62, %v293_v36 }
  0xba   : > { %v510_v26 = vadd.f32 %v491_v61, %v452_v13 }
  0xbb   : > { %v1534_v63 = vpop.f32.mrf.mxu0 }
  0xbc   : > { %v568_v37 = vadd.f32 %v549_v55, %v510_v26 }
  0xbf   : > { %v436_v0 = vpop.f32.mrf.mxu2 }
  0xc0   : > { %v494_v1 = vpop.f32.mrf.mxu3  ;;  %v339_v2 = vpop.f32.mrf.mxu1  ;;  %v453_v33 = vadd.f32 %v436_v0, %v338_v12 }
  0xc1   : > { %v340_v53 = vadd.f32 %v339_v2, %v1528_v47 }
  0xc2   : > { %v511_v30 = vadd.f32 %v494_v1, %v453_v33 }
  0xc3   : > { %v1536_v5 = vpop.f32.mrf.mxu0 }
  0xc4   : > { %v569_v0 = vadd.f32 %v1534_v63, %v511_v30 }
  0xc7   : > { %v438_v41 = vpop.f32.mrf.mxu2 }
  0xc8   : > { %v1538_v42 = vpop.f32.mrf.mxu3  ;;  %v1540_v32 = vpop.f32.mrf.mxu1  ;;  %v454_v62 = vadd.f32 %v438_v41, %v340_v53 }
  0xc9   : > { %v343_v21 = vadd.f32 %v1540_v32, %v1524_v45 }
  0xca   : > { %v512_v47 = vadd.f32 %v1538_v42, %v454_v62 }
  0xcb   : > { %v1542_v49 = vpop.f32.mrf.mxu0 }
  0xcf   : > { %v1544_v40 = vpop.f32.mrf.mxu2 }
  0xd0   : > { %v1546_v57 = vpop.f32.mrf.mxu3  ;;  %v1548_v6 = vpop.f32.mrf.mxu1 }
  0xd3   : > { %v1550_v7 = vpop.f32.mrf.mxu0 }
  0xd7   : > { %v1552_v8 = vpop.f32.mrf.mxu2 }
  0xd8   : > { %v1554_v14 = vpop.f32.mrf.mxu3  ;;  %v1556_v24 = vpop.f32.mrf.mxu1 }
  0xdb   : > { %v1558_v27 = vpop.f32.mrf.mxu0 }
  0xdf   : > { %v1560_v59 = vpop.f32.mrf.mxu2 }
  0xe0   : > { %v1562_v60 = vpop.f32.mrf.mxu3  ;;  %v1564_v50 = vpop.f32.mrf.mxu1 }
  0xe3   : > { %v1566_v16 = vpop.f32.mrf.mxu0 }
  0xe7   : > { %v1568_v3 = vpop.f32.mrf.mxu2 }
  0xe8   : > { %v1570_v9 = vpop.f32.mrf.mxu3  ;;  %v653_v11 = vpop.f32.mrf.mxu1 }
  0xe9   : > { %v673_v23 = vadd.f32 %v653_v11, %v567_v17 }
  0xeb   : > { %v833_v22 = vpop.f32.mrf.mxu0 }
  0xef   : > { %v711_v25 = vpop.f32.mrf.mxu2 }
  0xf0   : > { %v769_v4 = vpop.f32.mrf.mxu3  ;;  %v731_v18 = vadd.f32 %v711_v25, %v673_v23  ;;  %v655_v19 = vpop.f32.mrf.mxu1  ;;  %v455_v23 = vadd.f32 %v1544_v40, %v343_v21  ;;  %v570_v25 = vadd.f32 %v1536_v5, %v512_v47  ;;  %v345_v40 = vadd.f32 %v1548_v6, %v1530_v48 }
  0xf1   : > { %v674_v38 = vadd.f32 %v655_v19, %v568_v37 }
  0xf2   : > { %v789_v28 = vadd.f32 %v769_v4, %v731_v18  ;;  %v513_v19 = vadd.f32 %v1546_v57, %v455_v23  ;;  %v456_v33 = vadd.f32 %v1552_v8, %v345_v40  ;;  %v348_v8 = vadd.f32 %v1556_v24, %v1526_v46 }
  0xf3   : > { %v835_v31 = vpop.f32.mrf.mxu0 }
  0xf4   : > { %v853_v34 = vadd.f32 %v833_v22, %v789_v28 }
  0xf6   : > { %v865_v36 = vmul.f32 %v1575_v29, %v853_v34  ;;  %v571_v34 = vadd.f32 %v1542_v49, %v513_v19 }
  0xf7   : > { %v713_v43 = vpop.f32.mrf.mxu2 }
  0xf8   : > { %v771_v44 = vpop.f32.mrf.mxu3  ;;  %v877_v39 = vadd.f32 %v1581_v35, %v865_v36  ;;  %v732_v51 = vadd.f32 %v713_v43, %v674_v38  ;;  %v658_v52 = vpop.f32.mrf.mxu1 }
  0xf9   : > { %v675_v15 = vadd.f32 %v658_v52, %v569_v0  ;;  %v457_v52 = vadd.f32 %v1560_v59, %v348_v8  ;;  %v350_v59 = vadd.f32 %v1564_v50, %v1532_v20 }
  0xfa   : > { %v885_v54 = vmax.f32 %v877_v39, 0.0  ;;  %v790_v56 = vadd.f32 %v771_v44, %v732_v51  ;;  %v514_v44 = vadd.f32 %v1554_v14, %v456_v33 }
  0xfb   : > { %v838_v61 = vpop.f32.mrf.mxu0 }
  0xfc   : > { %894 = vst.msk [vmem:[%s1588_s13] sm:$0xff] %vm893_vm3, %v885_v54  ;;  %v854_v55 = vadd.f32 %v835_v31, %v790_v56  ;;  %v572_v53 = vadd.f32 %v1550_v7, %v514_v44  ;;  %v458_v7 = vadd.f32 %v1568_v3, %v350_v59 }
  0xfe   : > { %v866_v1 = vmul.f32 %v1575_v29, %v854_v55  ;;  %v515_v55 = vadd.f32 %v1562_v60, %v457_v52 }
  0xff   : > { %v716_v58 = vpop.f32.mrf.mxu2 }
 0x100   : > { %v774_v10 = vpop.f32.mrf.mxu3  ;;  %v878_v2 = vadd.f32 %v1581_v35, %v866_v1  ;;  %v733_v11 = vadd.f32 %v716_v58, %v675_v15  ;;  %v660_v41 = vpop.f32.mrf.mxu1 }
 0x101   : > { %v676_v4 = vadd.f32 %v660_v41, %v570_v25  ;;  %v516_v41 = vadd.f32 %v1570_v9, %v458_v7 }
 0x102   : > { %v886_v22 = vmax.f32 %v878_v2, 0.0  ;;  %v791_v13 = vadd.f32 %v774_v10, %v733_v11  ;;  %v573_v10 = vadd.f32 %v1558_v27, %v515_v55 }
 0x103   : > { %v840_v17 = vpop.f32.mrf.mxu0  ;;  %v574_v27 = vadd.f32 %v1566_v16, %v516_v41 }
 0x104   : > { %895 = vst.msk [vmem:[%s1588_s13 + $0x8] sm:$0xff] %vm893_vm3, %v886_v22  ;;  %v855_v63 = vadd.f32 %v838_v61, %v791_v13 }
 0x106   : > { %v867_v42 = vmul.f32 %v1575_v29, %v855_v63 }
 0x107   : > { %v718_v26 = vpop.f32.mrf.mxu2 }
 0x108   : > { %v776_v18 = vpop.f32.mrf.mxu3  ;;  %v879_v45 = vadd.f32 %v1581_v35, %v867_v42  ;;  %v734_v32 = vadd.f32 %v718_v26, %v676_v4  ;;  %v663_v12 = vpop.f32.mrf.mxu1 }
 0x109   : > { %v677_v36 = vadd.f32 %v663_v12, %v571_v34 }
 0x10a   : > { %v887_v28 = vmax.f32 %v879_v45, 0.0  ;;  %v792_v31 = vadd.f32 %v776_v18, %v734_v32 }
 0x10b   : > { %v843_v37 = vpop.f32.mrf.mxu0 }
 0x10c   : > { %896 = vst.msk [vmem:[%s1588_s13 + $0x10] sm:$0xff] %vm893_vm3, %v887_v28  ;;  %v856_v5 = vadd.f32 %v840_v17, %v792_v31 }
 0x10e   : > { %v868_v57 = vmul.f32 %v1575_v29, %v856_v5 }
 0x10f   : > { %v721_v38 = vpop.f32.mrf.mxu2 }
 0x110   : > { %v779_v43 = vpop.f32.mrf.mxu3  ;;  %v880_v48 = vadd.f32 %v1581_v35, %v868_v57  ;;  %v735_v6 = vadd.f32 %v721_v38, %v677_v36  ;;  %v665_v30 = vpop.f32.mrf.mxu1 }
 0x111   : > { %v678_v14 = vadd.f32 %v665_v30, %v572_v53 }
 0x112   : > { %v888_v39 = vmax.f32 %v880_v48, 0.0  ;;  %v793_v51 = vadd.f32 %v779_v43, %v735_v6 }
 0x113   : > { %v845_v56 = vpop.f32.mrf.mxu0 }
 0x114   : > { %897 = vst.msk [vmem:[%s1588_s13 + $0x18] sm:$0xff] %vm893_vm3, %v888_v39  ;;  %v857_v49 = vadd.f32 %v843_v37, %v793_v51 }
 0x116   : > { %v869_v54 = vmul.f32 %v1575_v29, %v857_v49 }
 0x117   : > { %v723_v61 = vpop.f32.mrf.mxu2 }
 0x118   : > { %v781_v62 = vpop.f32.mrf.mxu3  ;;  %v881_v46 = vadd.f32 %v1581_v35, %v869_v54  ;;  %v736_v24 = vadd.f32 %v723_v61, %v678_v14  ;;  %v668_v0 = vpop.f32.mrf.mxu1 }
 0x119   : > { %v679_v60 = vadd.f32 %v668_v0, %v573_v10 }
 0x11a   : > { %v889_v1 = vmax.f32 %v881_v46, 0.0  ;;  %v794_v15 = vadd.f32 %v781_v62, %v736_v24 }
 0x11b   : > { %v848_v21 = vpop.f32.mrf.mxu0 }
 0x11c   : > { %898 = vst.msk [vmem:[%s1588_s13 + $0x20] sm:$0xff] %vm893_vm3, %v889_v1  ;;  %v858_v58 = vadd.f32 %v845_v56, %v794_v15 }
 0x11e   : > { %v870_v47 = vmul.f32 %v1575_v29, %v858_v58 }
 0x11f   : > { %v726_v2 = vpop.f32.mrf.mxu2 }
 0x120   : > { %v784_v11 = vpop.f32.mrf.mxu3  ;;  %v882_v20 = vadd.f32 %v1581_v35, %v870_v47  ;;  %v737_v50 = vadd.f32 %v726_v2, %v679_v60  ;;  %v670_v3 = vpop.f32.mrf.mxu1 }
 0x121   : > { %v680_v63 = vadd.f32 %v670_v3, %v574_v27 }
 0x122   : > { %v890_v22 = vmax.f32 %v882_v20, 0.0  ;;  %v795_v13 = vadd.f32 %v784_v11, %v737_v50 }
 0x123   : > { %v850_v19 = vpop.f32.mrf.mxu0 }
 0x124   : > { %899 = vst.msk [vmem:[%s1588_s13 + $0x28] sm:$0xff] %vm893_vm3, %v890_v22  ;;  %v859_v17 = vadd.f32 %v848_v21, %v795_v13 }
 0x126   : > { %v871_v23 = vmul.f32 %v1575_v29, %v859_v17 }
 0x127   : > { %v728_v25 = vpop.f32.mrf.mxu2 }
 0x128   : > { %v883_v9 = vadd.f32 %v1581_v35, %v871_v23  ;;  %v738_v42 = vadd.f32 %v728_v25, %v680_v63  ;;  %v786_v4 = vpop.f32.mrf.mxu3 }
 0x12a   : > { %v891_v26 = vmax.f32 %v883_v9, 0.0  ;;  %v796_v18 = vadd.f32 %v786_v4, %v738_v42 }
 0x12c   : > { %900 = vst.msk [vmem:[%s1588_s13 + $0x30] sm:$0xff] %vm893_vm3, %v891_v26  ;;  %v860_v16 = vadd.f32 %v850_v19, %v796_v18 }
 0x12e   : > { %v872_v45 = vmul.f32 %v1575_v29, %v860_v16 }
 0x130   : > { %v884_v32 = vadd.f32 %v1581_v35, %v872_v45 }
 0x132   : > { %v892_v12 = vmax.f32 %v884_v32, 0.0 }
 0x134   : > { %901 = vst.msk [vmem:[%s1588_s13 + $0x38] sm:$0xff] %vm893_vm3, %v892_v12 }
 0x135   : > { %1143 = shalt.err (!%p1140_p3)
}
 0x136   : > { %s1180_s9 = smov 128   ;;  %s1181_s11 = smov 8  }
 0x137   : > { %1073 = dma.vmem_to_hbm [thread:$0]  (%p1245_p5), %s916_s27, 1024, %s918_s28, %s903_s19, %s1180_s9, %s1180_s9, %s1181_s11  }
 0x138 PF: > { %p1079_p4 = scmp.ge.s32.totalorder %s1178_s18, 2  ;;  %s932_s12 = sand.u32 1, %s1166_s15  }
 0x139   : > { %s933_s13 = scalar_lea.sflag [#allocation3], %s932_s12 }
 0x13a   : > { %p1076_p7 = pnand %p1079_p4, %p1249_p6 }
 0x13c   : > { %p1077_p8 = pneg %p1076_p7 }
 0x13e   : > { %1161 = dma.done.wait (%p1077_p8), %s933_s13, 1024  }
 0x13f   : > { %1163 = vsyncadd (%p1077_p8), %s933_s13, 4294966272  ;;  %p14_p9 = scmp.ge.s32.totalorder %s1232_s21, 4   ;;  %s1684_s15 = smov %s1170_s16 }
 0x140   : > { %s1685_s16 = smov %s1174_s17  ;;  %s1686_s17 = smov %s1243_s24 }
 0x141   : > { %s1687_s18 = smov %s1232_s21  ;;  %16 = sbr.rel (!%p14_p9) target bundleno = 3 (0x3), region = 82 }
 0x146   :  { %939 = vsyncpa [#allocation3], 1 }
 0x147   :  { %941 = vsyncpa [#allocation3 + $0x1], 1 }

</bundles_post_ra>
